<compile_context>
chip_gen: v6e
topology: v6e:2x2x1
jax: 0.10.0
libtpu: 0.0.40
codegen_flags: <defaults>
</compile_context>

<pallas_src>
import jax
import jax.numpy as jnp
from jax.experimental import pallas as pl
from jax.experimental.pallas import tpu as pltpu

LANES = 128


def _round_up(n, m):
    return ((n + m - 1) // m) * m


def _batch_tile_max():
    # tm=256 matches the 2x256^2 MXU on v6e/v7x; on v5e (4x128^2 MXU) a 256
    # tile gains nothing and doubles live-register / VMEM pressure.
    try:
        kind = jax.devices()[0].device_kind.lower()
    except Exception:
        return 128
    if "v5e" in kind or "v5 lite" in kind or "v5lite" in kind:
        return 128
    return 256


def _pick_batch_tile(B, tm_max):
    b8 = _round_up(B, 8)
    tm = min(tm_max, b8)
    # v7x has 2 TensorCores: prefer >= 2 grid steps when the batch allows it.
    if tm == b8 and b8 >= 16:
        tm = _round_up(-(-b8 // 2), 8)
    return tm


# ---------------- forward kernel: ema_net(x) ----------------
def _mlp_fwd_kernel(x_ref, w1_ref, b1_ref, w2_ref, b2_ref, o_ref):
    # bf16 operands (pre-cast host side) -> MXU fast path, f32 accumulation.
    h = jnp.dot(x_ref[...], w1_ref[...], preferred_element_type=jnp.float32)
    h = jnp.maximum(h + b1_ref[...], 0.0)                 # f32 epilogue
    o = jnp.dot(h.astype(jnp.bfloat16), w2_ref[...],
                preferred_element_type=jnp.float32) + b2_ref[...]
    o_ref[...] = o.astype(o_ref.dtype)
    # TODO(synk): for realistic hidden sizes tile H (extra grid axis + f32 VMEM
    # accumulator) so the live (tm, H_p) intermediate never spills.


def prepare_ema_forward_params(ema_params):
    """Pad feature dims to lane multiples and pre-cast matmul operands to bf16.

    Call this once after every ema_update() and cache the result; ema_forward
    then pays no per-call weight padding / casting / HBM rewrite.
    """
    w1, b1, w2, b2 = ema_params
    D, H = w1.shape
    Dout = w2.shape[1]
    D_p, H_p, O_p = (_round_up(d, LANES) for d in (D, H, Dout))
    bf16, f32 = jnp.bfloat16, jnp.float32
    w1p = jnp.zeros((D_p, H_p), bf16).at[:D, :H].set(w1.astype(bf16))
    b1p = jnp.zeros((1, H_p), f32).at[:, :H].set(b1.reshape(1, H).astype(f32))
    w2p = jnp.zeros((H_p, O_p), bf16).at[:H, :Dout].set(w2.astype(bf16))
    b2p = jnp.zeros((1, O_p), f32).at[:, :Dout].set(b2.reshape(1, Dout).astype(f32))
    return (w1p, b1p, w2p, b2p), (D, H, Dout)


def ema_forward(x, fwd_params, dims):
    """EMA.forward(x): run the (EMA) network weights on x, no grad."""
    w1p, b1p, w2p, b2p = fwd_params
    D, H, Dout = dims
    B = x.shape[0]
    D_p, H_p = w1p.shape
    O_p = w2p.shape[1]

    tm = _pick_batch_tile(B, _batch_tile_max())
    B_p = _round_up(B, tm)

    # bf16 activations: half the per-tile HBM->VMEM bytes, no in-kernel cast.
    xp = jnp.zeros((B_p, D_p), jnp.bfloat16).at[:B, :D].set(x.astype(jnp.bfloat16))

    grid = (B_p // tm,)
    out = pl.pallas_call(
        _mlp_fwd_kernel,
        out_shape=jax.ShapeDtypeStruct((B_p, O_p), x.dtype),
        grid=grid,
        in_specs=[
            pl.BlockSpec((tm, D_p), lambda i: (i, 0)),   # activations: per-tile
            # Weights/biases: constant index_map -> resident across batch tiles.
            # TODO(synk): on v7x (64 MiB VMEM) add pipeline_mode=pl.Buffered(1)
            # for these constant blocks once the weights reach MiB scale, and
            # switch to an (M,N,K)-gridded accumulator matmul beyond that.
            pl.BlockSpec((D_p, H_p), lambda i: (0, 0)),
            pl.BlockSpec((1, H_p), lambda i: (0, 0)),
            pl.BlockSpec((H_p, O_p), lambda i: (0, 0)),
            pl.BlockSpec((1, O_p), lambda i: (0, 0)),
        ],
        out_specs=pl.BlockSpec((tm, O_p), lambda i: (i, 0)),
        compiler_params=pltpu.CompilerParams(
            dimension_semantics=("parallel",)),
    )(xp, w1p, b1p, w2p, b2p)
    return out[:B, :Dout]


# ---------------- update kernel: ema = tau*net + (1-tau)*ema ----------------
def _make_blend_kernel(n_params):
    def kernel(*refs):
        tau_ref = refs[0]
        p_refs = refs[1:1 + n_params]
        e_refs = refs[1 + n_params:1 + 2 * n_params]
        o_refs = refs[1 + 2 * n_params:]
        tau = tau_ref[0]
        for p_ref, e_ref, o_ref in zip(p_refs, e_refs, o_refs):
            # Blend in f32 regardless of param dtype so small-tau increments
            # don't underflow (e.g. bf16 params with tau=0.01).
            p = p_ref[...].astype(jnp.float32)
            e = e_ref[...].astype(jnp.float32)
            o_ref[...] = (tau * p + (1.0 - tau) * e).astype(o_ref.dtype)
    return kernel


def ema_update(net_params, ema_params, tau):
    """EMA.update(): ema_p <- tau*p + (1-tau)*ema_p, in place on the EMA buffers."""
    # Fast paths for concrete Python tau (matches the PyTorch module exactly).
    if isinstance(tau, (int, float)):
        if tau == 1:
            # load_state_dict(net.state_dict()) -> fresh copies of the live params
            return tuple(jnp.asarray(p).astype(e.dtype)
                         for p, e in zip(net_params, ema_params))
        if tau <= 0:
            return tuple(ema_params)

    n = len(net_params)
    tau_arr = jnp.asarray([tau], dtype=jnp.float32)   # SMEM scalar, no recompile per tau

    vmem = pltpu.MemorySpace.VMEM
    in_specs = ([pl.BlockSpec(memory_space=pltpu.MemorySpace.SMEM)]
                + [pl.BlockSpec(memory_space=vmem)] * (2 * n))
    out_specs = tuple(pl.BlockSpec(memory_space=vmem) for _ in range(n))
    out_shape = tuple(jax.ShapeDtypeStruct(e.shape, e.dtype) for e in ema_params)
    # Alias each EMA input buffer to its matching output: true in-place update
    # of the caller's EMA buffers -- no staging slab, no concat/pad/unpack.
    aliases = {1 + n + i: i for i in range(n)}

    # TODO(synk): for multi-MiB parameters, give the large tensors a grid +
    # (rows,128)-tiled BlockSpecs (2-4 MiB blocks; ~2 MiB or an explicit
    # vmem_limit_bytes on v5e's 16 MiB default scoped VMEM).
    out = pl.pallas_call(
        _make_blend_kernel(n),
        out_shape=out_shape,
        in_specs=in_specs,
        out_specs=out_specs,
        input_output_aliases=aliases,
    )(tau_arr, *net_params, *ema_params)
    return tuple(out)


if __name__ == "__main__":
    key = jax.random.PRNGKey(0)
    B, D, H = 8, 32, 64
    tau = 0.01

    k = jax.random.split(key, 6)
    # "net" parameters (stand-in for the arbitrary wrapped `net`: a 2-layer MLP)
    w1 = 0.1 * jax.random.normal(k[0], (D, H), jnp.float32)
    b1 = 0.1 * jax.random.normal(k[1], (1, H), jnp.float32)
    w2 = 0.1 * jax.random.normal(k[2], (H, D), jnp.float32)
    b2 = 0.1 * jax.random.normal(k[3], (1, D), jnp.float32)
    net_params = (w1, b1, w2, b2)

    # ema_net = deepcopy(net) at construction time
    ema_params = tuple(p.copy() for p in net_params)

    # one "training step" changes the live net, then EMA.update()
    net_params_after = tuple(
        p + 0.05 * jax.random.normal(k[4], p.shape, p.dtype) for p in net_params
    )
    ema_params = ema_update(net_params_after, ema_params, tau)

    # ---- update reference check (pure-JAX f32 blend) ----
    ref_ema = tuple(
        tau * p + (1.0 - tau) * ep
        for p, ep in zip(net_params_after, net_params)
    )
    assert all(
        jnp.allclose(a, b, atol=1e-6, rtol=1e-6)
        for a, b in zip(ema_params, ref_ema)
    )

    # pre-pad / pre-cast the EMA weights once (cached across forward calls)
    fwd_params, dims = prepare_ema_forward_params(ema_params)

    # EMA.forward(x): run the EMA network on x
    x = jax.random.normal(k[5], (B, D), jnp.float32)
    y = ema_forward(x, fwd_params, dims)
    jax.block_until_ready(y)

    # ---- forward reference check (same bf16-operand / f32-accum math, using
    #      the Pallas-updated EMA params so only the forward kernel is tested)
    rw1, rb1, rw2, rb2 = ema_params
    bf16 = jnp.bfloat16
    h_ref = jnp.maximum(
        jnp.dot(x.astype(bf16), rw1.astype(bf16),
                preferred_element_type=jnp.float32) + rb1, 0.0)
    ref_y = jnp.dot(h_ref.astype(bf16), rw2.astype(bf16),
                    preferred_element_type=jnp.float32) + rb2
    assert jnp.allclose(y, ref_y, atol=1e-4, rtol=1e-4)

    print("KERNEL_OK")
</pallas_src>

<mosaic_0001>
module attributes {stable_mosaic.version = 11 : i64} {
  func.func @kernel(%arg0: memref<1xf32, #tpu.memory_space<smem>>, %arg1: memref<32x64xf32, #tpu.memory_space<vmem>>, %arg2: memref<1x64xf32, #tpu.memory_space<vmem>>, %arg3: memref<64x32xf32, #tpu.memory_space<vmem>>, %arg4: memref<1x32xf32, #tpu.memory_space<vmem>>, %arg5: memref<32x64xf32, #tpu.memory_space<vmem>>, %arg6: memref<1x64xf32, #tpu.memory_space<vmem>>, %arg7: memref<64x32xf32, #tpu.memory_space<vmem>>, %arg8: memref<1x32xf32, #tpu.memory_space<vmem>>, %arg9: memref<32x64xf32, #tpu.memory_space<vmem>>, %arg10: memref<1x64xf32, #tpu.memory_space<vmem>>, %arg11: memref<64x32xf32, #tpu.memory_space<vmem>>, %arg12: memref<1x32xf32, #tpu.memory_space<vmem>>) attributes {dimension_semantics = [], scalar_prefetch = 0 : i64, scratch_operands = 0 : i64, tpu.core_type = #tpu.core_type<tc>} {
    %c0 = arith.constant 0 : index
    %0 = memref.load %arg0[%c0] : memref<1xf32, #tpu.memory_space<smem>>
    %c0_0 = arith.constant 0 : index
    %c0_1 = arith.constant 0 : index
    %1 = vector.load %arg1[%c0_0, %c0_1] : memref<32x64xf32, #tpu.memory_space<vmem>>, vector<32x64xf32>
    %c0_2 = arith.constant 0 : index
    %c0_3 = arith.constant 0 : index
    %2 = vector.load %arg5[%c0_2, %c0_3] : memref<32x64xf32, #tpu.memory_space<vmem>>, vector<32x64xf32>
    %3 = vector.broadcast %0 : f32 to vector<32x64xf32>
    %4 = arith.mulf %3, %1 : vector<32x64xf32>
    %cst = arith.constant 1.000000e+00 : f32
    %5 = arith.subf %cst, %0 : f32
    %6 = vector.broadcast %5 : f32 to vector<32x64xf32>
    %7 = arith.mulf %6, %2 : vector<32x64xf32>
    %8 = arith.addf %4, %7 : vector<32x64xf32>
    %c0_4 = arith.constant 0 : index
    %c0_5 = arith.constant 0 : index
    %9 = vector.load %arg9[%c0_4, %c0_5] : memref<32x64xf32, #tpu.memory_space<vmem>>, vector<32x64xf32>
    tpu.vector_store %arg9[%c0_4, %c0_5], %8 {strides = array<i32>} : memref<32x64xf32, #tpu.memory_space<vmem>>, vector<32x64xf32>,
    %c0_6 = arith.constant 0 : index
    %c0_7 = arith.constant 0 : index
    %10 = vector.load %arg2[%c0_6, %c0_7] : memref<1x64xf32, #tpu.memory_space<vmem>>, vector<1x64xf32>
    %c0_8 = arith.constant 0 : index
    %c0_9 = arith.constant 0 : index
    %11 = vector.load %arg6[%c0_8, %c0_9] : memref<1x64xf32, #tpu.memory_space<vmem>>, vector<1x64xf32>
    %12 = vector.broadcast %0 : f32 to vector<1x64xf32>
    %13 = arith.mulf %12, %10 : vector<1x64xf32>
    %cst_10 = arith.constant 1.000000e+00 : f32
    %14 = arith.subf %cst_10, %0 : f32
    %15 = vector.broadcast %14 : f32 to vector<1x64xf32>
    %16 = arith.mulf %15, %11 : vector<1x64xf32>
    %17 = arith.addf %13, %16 : vector<1x64xf32>
    %c0_11 = arith.constant 0 : index
    %c0_12 = arith.constant 0 : index
    %18 = vector.load %arg10[%c0_11, %c0_12] : memref<1x64xf32, #tpu.memory_space<vmem>>, vector<1x64xf32>
    tpu.vector_store %arg10[%c0_11, %c0_12], %17 {strides = array<i32>} : memref<1x64xf32, #tpu.memory_space<vmem>>, vector<1x64xf32>,
    %c0_13 = arith.constant 0 : index
    %c0_14 = arith.constant 0 : index
    %19 = vector.load %arg3[%c0_13, %c0_14] : memref<64x32xf32, #tpu.memory_space<vmem>>, vector<64x32xf32>
    %c0_15 = arith.constant 0 : index
    %c0_16 = arith.constant 0 : index
    %20 = vector.load %arg7[%c0_15, %c0_16] : memref<64x32xf32, #tpu.memory_space<vmem>>, vector<64x32xf32>
    %21 = vector.broadcast %0 : f32 to vector<64x32xf32>
    %22 = arith.mulf %21, %19 : vector<64x32xf32>
    %cst_17 = arith.constant 1.000000e+00 : f32
    %23 = arith.subf %cst_17, %0 : f32
    %24 = vector.broadcast %23 : f32 to vector<64x32xf32>
    %25 = arith.mulf %24, %20 : vector<64x32xf32>
    %26 = arith.addf %22, %25 : vector<64x32xf32>
    %c0_18 = arith.constant 0 : index
    %c0_19 = arith.constant 0 : index
    %27 = vector.load %arg11[%c0_18, %c0_19] : memref<64x32xf32, #tpu.memory_space<vmem>>, vector<64x32xf32>
    tpu.vector_store %arg11[%c0_18, %c0_19], %26 {strides = array<i32>} : memref<64x32xf32, #tpu.memory_space<vmem>>, vector<64x32xf32>,
    %c0_20 = arith.constant 0 : index
    %c0_21 = arith.constant 0 : index
    %28 = vector.load %arg4[%c0_20, %c0_21] : memref<1x32xf32, #tpu.memory_space<vmem>>, vector<1x32xf32>
    %c0_22 = arith.constant 0 : index
    %c0_23 = arith.constant 0 : index
    %29 = vector.load %arg8[%c0_22, %c0_23] : memref<1x32xf32, #tpu.memory_space<vmem>>, vector<1x32xf32>
    %30 = vector.broadcast %0 : f32 to vector<1x32xf32>
    %31 = arith.mulf %30, %28 : vector<1x32xf32>
    %cst_24 = arith.constant 1.000000e+00 : f32
    %32 = arith.subf %cst_24, %0 : f32
    %33 = vector.broadcast %32 : f32 to vector<1x32xf32>
    %34 = arith.mulf %33, %29 : vector<1x32xf32>
    %35 = arith.addf %31, %34 : vector<1x32xf32>
    %c0_25 = arith.constant 0 : index
    %c0_26 = arith.constant 0 : index
    %36 = vector.load %arg12[%c0_25, %c0_26] : memref<1x32xf32, #tpu.memory_space<vmem>>, vector<1x32xf32>
    tpu.vector_store %arg12[%c0_25, %c0_26], %35 {strides = array<i32>} : memref<1x32xf32, #tpu.memory_space<vmem>>, vector<1x32xf32>,
    return
  }
}

</mosaic_0001>

<bundles_post_ra>
// kernel: tpu_custom_call.1
= control target key start
LH: loop header
LB: loop body
LE: loop exit
PB: predicated region body
PF: predicated region fallthrough
CT: control target
= control target key end

     0   :  { %vm61_vm0 = vcmask 523264   ;;  %vm71_vm1 = vcmask 516096   ;;  %vm113_vm2 = vcmask 261120   ;;  %vm127_vm3 = vcmask 253952   ;;  %s387_s0 = inlined_call_operand.<no memory space> [shape: f32[1], index: 0, kind: input, shape index: {}]   ;;  %s388_s1 = inlined_call_operand.vmem [shape: f32[32,64], index: 1, kind: input, shape index: {}]   ;;  %s389_s5 = inlined_call_operand.vmem [shape: f32[32,64], index: 5, kind: input, shape index: {}, may-alias: {5,9}]   ;;  %s390_s2 = inlined_call_operand.vmem [shape: f32[1,64], index: 2, kind: input, shape index: {}]   ;;  %s391_s6 = inlined_call_operand.vmem [shape: f32[1,64], index: 6, kind: input, shape index: {}, may-alias: {6,10}]   ;;  %s392_s3 = inlined_call_operand.vmem [shape: f32[64,32], index: 3, kind: input, shape index: {}]   ;;  %s393_s7 = inlined_call_operand.vmem [shape: f32[64,32], index: 7, kind: input, shape index: {}, may-alias: {7,11}]   ;;  %s394_s9 = inlined_call_operand.vmem [shape: f32[32,64], index: 9, kind: output, shape index: {0}, may-alias: {5,9}]   ;;  %s395_s10 = inlined_call_operand.vmem [shape: f32[1,64], index: 10, kind: output, shape index: {1}, may-alias: {6,10}]   ;;  %s396_s4 = inlined_call_operand.vmem [shape: f32[1,32], index: 4, kind: input, shape index: {}]   ;;  %s397_s11 = inlined_call_operand.vmem [shape: f32[64,32], index: 11, kind: output, shape index: {2}, may-alias: {7,11}]   ;;  %s398_s8 = inlined_call_operand.vmem [shape: f32[1,32], index: 8, kind: input, shape index: {}, may-alias: {8,12}]   ;;  %s399_s12 = inlined_call_operand.vmem [shape: f32[1,32], index: 12, kind: output, shape index: {3}, may-alias: {8,12}]  }
   0x1   :  { %v38_v0 = vld [vmem:[%s388_s1] sm:$0xff]  ;;  %v219_v2 = vstv %s387_s0  ;;  %s51_s29 = ssub.f32 1.0, %s387_s0  ;;  %v39_v3 = vld [vmem:[%s388_s1 + $0x8] sm:$0xff]  ;;  %v40_v7 = vld [vmem:[%s388_s1 + $0x10] sm:$0xff] }
   0x2   :  { %v42_v1 = vld [vmem:[%s389_s5] sm:$0xff]  ;;  %v47_v4 = vmul.f32 %v219_v2, %v38_v0  ;;  %v43_v5 = vld [vmem:[%s389_s5 + $0x8] sm:$0xff]  ;;  %v48_v6 = vmul.f32 %v219_v2, %v39_v3  ;;  %v44_v8 = vld [vmem:[%s389_s5 + $0x10] sm:$0xff]  ;;  %v49_v10 = vmul.f32 %v219_v2, %v40_v7 }
   0x3   :  { %v238_v9 = vstv %s51_s29  ;;  %v41_v11 = vld [vmem:[%s388_s1 + $0x18] sm:$0xff]  ;;  %v66_v13 = vld [vmem:[%s390_s2] sm:$0x1]  ;;  %v74_v25 = vld [vmem:[%s392_s3 + $0x8] sm:$0xff] }
   0x4   :  { %v45_v12 = vld [vmem:[%s389_s5 + $0x18] sm:$0xff]  ;;  %v53_v14 = vmul.f32 %v238_v9, %v42_v1  ;;  %v54_v15 = vmul.f32 %v238_v9, %v43_v5  ;;  %v55_v16 = vmul.f32 %v238_v9, %v44_v8  ;;  %v50_v17 = vmul.f32 %v219_v2, %v41_v11  ;;  %v67_v18 = vld [vmem:[%s391_s6] sm:$0x1]  ;;  %v82_v26 = vld [vmem:[%s393_s7 + $0x8] sm:$0xff] }
   0x5   :  { %v73_v19 = vld [vmem:[%s392_s3] sm:$0xff]  ;;  %v56_v21 = vmul.f32 %v238_v9, %v45_v12  ;;  %v68_v22 = vmul.f32 %v66_v13, %v219_v2  ;;  %v69_v23 = vmul.f32 %v67_v18, %v238_v9  ;;  %v75_v27 = vld [vmem:[%s392_s3 + $0x10] sm:$0xff]  ;;  %v76_v33 = vld [vmem:[%s392_s3 + $0x18] sm:$0xff]  ;;  %v90_v37 = vmul.f32 %v74_v25, %v219_v2 }
   0x6   :  { %v81_v20 = vld [vmem:[%s393_s7] sm:$0xff]  ;;  %v89_v24 = vmul.f32 %v73_v19, %v219_v2  ;;  %v57_v28 = vadd.f32 %v53_v14, %v47_v4  ;;  %v58_v29 = vadd.f32 %v54_v15, %v48_v6  ;;  %v59_v30 = vadd.f32 %v55_v16, %v49_v10  ;;  %v83_v32 = vld [vmem:[%s393_s7 + $0x10] sm:$0xff]  ;;  %v84_v34 = vld [vmem:[%s393_s7 + $0x18] sm:$0xff] }
   0x7   :  { %v97_v31 = vmul.f32 %v81_v20, %v238_v9  ;;  %v60_v35 = vadd.f32 %v56_v21, %v50_v17  ;;  %v70_v36 = vadd.f32 %v69_v23, %v68_v22  ;;  %v98_v38 = vmul.f32 %v82_v26, %v238_v9  ;;  %v77_v39 = vld [vmem:[%s392_s3 + $0x20] sm:$0xff]  ;;  %v78_v41 = vld [vmem:[%s392_s3 + $0x28] sm:$0xff]  ;;  %v79_v47 = vld [vmem:[%s392_s3 + $0x30] sm:$0xff] }
   0x8   :  { %v85_v40 = vld [vmem:[%s393_s7 + $0x20] sm:$0xff]  ;;  %62 = vst.msk [vmem:[%s394_s9] sm:$0xff] %vm61_vm0, %v57_v28  ;;  %63 = vst.msk [vmem:[%s394_s9 + $0x8] sm:$0xff] %vm61_vm0, %v58_v29  ;;  %v91_v43 = vmul.f32 %v75_v27, %v219_v2  ;;  %v99_v44 = vmul.f32 %v83_v32, %v238_v9  ;;  %v92_v45 = vmul.f32 %v76_v33, %v219_v2  ;;  %v86_v46 = vld [vmem:[%s393_s7 + $0x28] sm:$0xff] }
   0x9   :  { %64 = vst.msk [vmem:[%s394_s9 + $0x10] sm:$0xff] %vm61_vm0, %v59_v30  ;;  %v105_v42 = vadd.f32 %v97_v31, %v89_v24  ;;  %v87_v48 = vld [vmem:[%s393_s7 + $0x30] sm:$0xff]  ;;  %65 = vst.msk [vmem:[%s394_s9 + $0x18] sm:$0xff] %vm61_vm0, %v60_v35  ;;  %v106_v49 = vadd.f32 %v98_v38, %v90_v37  ;;  %v100_v50 = vmul.f32 %v84_v34, %v238_v9  ;;  %v80_v53 = vld [vmem:[%s392_s3 + $0x38] sm:$0xff] }
   0xa   :  { %72 = vst.msk [vmem:[%s395_s10] sm:$0x1] %vm71_vm1, %v70_v36  ;;  %v93_v51 = vmul.f32 %v77_v39, %v219_v2  ;;  %v101_v52 = vmul.f32 %v85_v40, %v238_v9  ;;  %v88_v54 = vld [vmem:[%s393_s7 + $0x38] sm:$0xff]  ;;  %v122_v55 = vld [vmem:[%s396_s4] sm:$0x1]  ;;  %v107_v56 = vadd.f32 %v99_v44, %v91_v43  ;;  %v94_v57 = vmul.f32 %v78_v41, %v219_v2 }
   0xb   :  { %114 = vst.msk [vmem:[%s397_s11] sm:$0xff] %vm113_vm2, %v105_v42  ;;  %v102_v58 = vmul.f32 %v86_v46, %v238_v9  ;;  %v95_v59 = vmul.f32 %v79_v47, %v219_v2  ;;  %v123_v60 = vld [vmem:[%s398_s8] sm:$0x1]  ;;  %115 = vst.msk [vmem:[%s397_s11 + $0x8] sm:$0xff] %vm113_vm2, %v106_v49  ;;  %v108_v61 = vadd.f32 %v100_v50, %v92_v45 }
   0xc   :  { %v109_v62 = vadd.f32 %v101_v52, %v93_v51  ;;  %v103_v63 = vmul.f32 %v87_v48, %v238_v9  ;;  %v96_v0 = vmul.f32 %v80_v53, %v219_v2  ;;  %116 = vst.msk [vmem:[%s397_s11 + $0x10] sm:$0xff] %vm113_vm2, %v107_v56  ;;  %v104_v3 = vmul.f32 %v88_v54, %v238_v9 }
   0xd   :  { %v110_v1 = vadd.f32 %v102_v58, %v94_v57  ;;  %v124_v4 = vmul.f32 %v122_v55, %v219_v2  ;;  %v125_v5 = vmul.f32 %v123_v60, %v238_v9  ;;  %117 = vst.msk [vmem:[%s397_s11 + $0x18] sm:$0xff] %vm113_vm2, %v108_v61 }
   0xe   :  { %118 = vst.msk [vmem:[%s397_s11 + $0x20] sm:$0xff] %vm113_vm2, %v109_v62  ;;  %v111_v6 = vadd.f32 %v103_v63, %v95_v59  ;;  %v112_v2 = vadd.f32 %v104_v3, %v96_v0 }
   0xf   :  { %119 = vst.msk [vmem:[%s397_s11 + $0x28] sm:$0xff] %vm113_vm2, %v110_v1  ;;  %v126_v7 = vadd.f32 %v125_v5, %v124_v4 }
  0x10   :  { %120 = vst.msk [vmem:[%s397_s11 + $0x30] sm:$0xff] %vm113_vm2, %v111_v6  ;;  %121 = vst.msk [vmem:[%s397_s11 + $0x38] sm:$0xff] %vm113_vm2, %v112_v2 }
  0x11   :  { %128 = vst.msk [vmem:[%s399_s12] sm:$0x1] %vm127_vm3, %v126_v7 }

</bundles_post_ra>
